<compile_context>
chip_gen: v7x
topology: tpu7x:2x2x1
jax: 0.10.0
libtpu: 0.0.40
codegen_flags: <defaults>
</compile_context>

<pallas_src>
import jax
import jax.numpy as jnp
from jax.experimental import pallas as pl
from jax.experimental.pallas import tpu as pltpu

IMAGE_HEIGHT = 14
IMAGE_WIDTH = 14
IN_FEATS = IMAGE_HEIGHT * IMAGE_WIDTH   # 196
IN2 = 2 * IN_FEATS                      # 392  (left | right flattened)
HID = 10
CAT = 2 * HID                           # 20
OUT_W = CAT + 1                         # lanes 0:20 = aux, lane 20 = sigmoid


def simplefc_kernel(x_ref, w1_ref, b1_ref, w2_ref, b2_ref, w3_ref, b3_ref,
                    out_ref):
    """One batch block of the fused forward.

    x_ref  : (bB, 392)  rows are [left_flat | right_flat]
    w1_ref : (392, 20)  block-diag(fc1.W, fc1.W)   (pre-transposed, x @ W)
    b1_ref : (1, 20)    [fc1.b | fc1.b]
    w2_ref : (20, 20)   block-diag(fc2.W, fc2.W)
    b2_ref : (1, 20)    [fc2.b | fc2.b]
    w3_ref : (1, 20)    fc3 weight as a row vector
    b3_ref : (1, 1)
    out_ref: (bB, 21)   lanes 0:20 = aux (pre-ReLU concat), lane 20 = sigmoid
    """
    h1 = jnp.dot(x_ref[...], w1_ref[...],
                 preferred_element_type=jnp.float32) + b1_ref[...]
    h1 = jnp.maximum(h1, 0.0)

    # fc2 on both towers at once; this IS the pre-ReLU concatenation (aux_out).
    aux = jnp.dot(h1, w2_ref[...],
                  preferred_element_type=jnp.float32) + b2_ref[...]

    h = jnp.maximum(aux, 0.0)
    # fc3 (20 -> 1): VPU multiply + lane reduce, keeps the MXU out of the N=1 case.
    logit = jnp.sum(h * w3_ref[...], axis=-1, keepdims=True) + b3_ref[...]

    # Single full-block store; no readback of aux from VMEM.
    out_ref[...] = jnp.concatenate([aux, jax.nn.sigmoid(logit)], axis=-1)


def fuse_params(params, matmul_dtype=jnp.float32):
    """Build block-diagonal weights so one matmul drives both shared towers."""
    w1, b1, w2, b2, w3, b3 = params
    w1f = (jnp.zeros((IN2, CAT), jnp.float32)
           .at[:IN_FEATS, :HID].set(w1)
           .at[IN_FEATS:, HID:].set(w1)).astype(matmul_dtype)
    b1f = jnp.concatenate([b1, b1], axis=-1)          # (1, 20)
    w2f = (jnp.zeros((CAT, CAT), jnp.float32)
           .at[:HID, :HID].set(w2)
           .at[HID:, HID:].set(w2))
    b2f = jnp.concatenate([b2, b2], axis=-1)          # (1, 20)
    w3r = w3.reshape(1, CAT)                          # (1, 20) row vector
    return w1f, b1f, w2f, b2f, w3r, b3


def simplefc_forward(x, params, *, block_b=1024):
    """x: (B, 2, H, W).  Returns (out (B,), aux_out (B, 20)) like the PyTorch module."""
    B = x.shape[0]
    assert x.shape[1:] == (2, IMAGE_HEIGHT, IMAGE_WIDTH)

    # torch.chunk(x, 2, dim=1) + .view(B, -1) + cat  ==  this contiguous,
    # zero-copy reshape: each row is [left image flat | right image flat].
    x2 = x.reshape(B, IN2)

    w1f, b1f, w2f, b2f, w3r, b3 = fuse_params(params, matmul_dtype=x.dtype)

    bb = B if B <= block_b else block_b               # batch tile (multiple of 8 at scale)
    grid = (pl.cdiv(B, bb),)
    const = lambda i: (0, 0)                          # weights stay VMEM-resident

    slab = pl.pallas_call(
        simplefc_kernel,
        out_shape=jax.ShapeDtypeStruct((B, OUT_W), jnp.float32),
        grid_spec=pltpu.PrefetchScalarGridSpec(
            num_scalar_prefetch=0,
            grid=grid,
            in_specs=[
                pl.BlockSpec((bb, IN2), lambda i: (i, 0)),   # x, blocked over batch
                pl.BlockSpec((IN2, CAT), const),             # w1 (block-diag)
                pl.BlockSpec((1, CAT), const),               # b1
                pl.BlockSpec((CAT, CAT), const),             # w2 (block-diag)
                pl.BlockSpec((1, CAT), const),               # b2
                pl.BlockSpec((1, CAT), const),               # w3 row
                pl.BlockSpec((1, 1), const),                 # b3
            ],
            out_specs=pl.BlockSpec((bb, OUT_W), lambda i: (i, 0)),
        ),
        compiler_params=pltpu.CompilerParams(
            dimension_semantics=("parallel",)),
    )(x2, w1f, b1f, w2f, b2f, w3r, b3)

    return slab[:, CAT], slab[:, :CAT]                # (out, aux_out)


def init_params(key):
    """nn.Linear-style init; weights stored pre-transposed (in, out) for x @ W."""
    k1, k2, k3, k4, k5, k6 = jax.random.split(key, 6)

    def uni(k, shape, fan_in):
        bound = 1.0 / jnp.sqrt(float(fan_in))
        return jax.random.uniform(k, shape, jnp.float32, -bound, bound)

    w1 = uni(k1, (IN_FEATS, HID), IN_FEATS)
    b1 = uni(k2, (1, HID), IN_FEATS)
    w2 = uni(k3, (HID, HID), HID)
    b2 = uni(k4, (1, HID), HID)
    w3 = uni(k5, (CAT, 1), CAT)
    b3 = uni(k6, (1, 1), CAT)
    return (w1, b1, w2, b2, w3, b3)


def simplefc_reference(x, params):
    """Direct (unfused) translation of the PyTorch forward, for sanity checking."""
    w1, b1, w2, b2, w3, b3 = params
    B = x.shape[0]
    left = x[:, 0].reshape(B, IN_FEATS)
    right = x[:, 1].reshape(B, IN_FEATS)

    def tower(v):
        h = jnp.maximum(v @ w1 + b1, 0.0)
        return h @ w2 + b2

    aux = jnp.concatenate([tower(left), tower(right)], axis=-1)
    out = jax.nn.sigmoid(jnp.maximum(aux, 0.0) @ w3 + b3)[:, 0]
    return out, aux


if __name__ == "__main__":
    key = jax.random.PRNGKey(0)
    kx, kp = jax.random.split(key)

    B = 2
    x = jax.random.normal(kx, (B, 2, IMAGE_HEIGHT, IMAGE_WIDTH), jnp.float32)
    params = init_params(kp)

    out, aux_out = simplefc_forward(x, params)
    jax.block_until_ready((out, aux_out))

    assert out.shape == (B,)
    assert aux_out.shape == (B, CAT)

    ref_out, ref_aux = simplefc_reference(x, params)
    assert jnp.allclose(out, ref_out, rtol=1e-2, atol=1e-2)
    assert jnp.allclose(aux_out, ref_aux, rtol=1e-2, atol=1e-2)

    print("KERNEL_OK")
</pallas_src>

<mosaic_0001>
module attributes {stable_mosaic.version = 11 : i64} {
  func.func @simplefc_kernel(%arg0: i32, %arg1: memref<2x392xf32, #tpu.memory_space<vmem>>, %arg2: memref<392x20xf32, #tpu.memory_space<vmem>>, %arg3: memref<1x20xf32, #tpu.memory_space<vmem>>, %arg4: memref<20x20xf32, #tpu.memory_space<vmem>>, %arg5: memref<1x20xf32, #tpu.memory_space<vmem>>, %arg6: memref<1x20xf32, #tpu.memory_space<vmem>>, %arg7: memref<1x1xf32, #tpu.memory_space<vmem>>, %arg8: memref<2x21xf32, #tpu.memory_space<vmem>>) attributes {dimension_semantics = [#tpu.dimension_semantics<parallel>], iteration_bounds = array<i64: 1>, scalar_prefetch = 0 : i64, scratch_operands = 0 : i64, tpu.core_type = #tpu.core_type<tc>, window_params = [{transform_indices = @transform_0, window_bounds = array<i64: 2, 392>}, {pipeline_mode = #tpu.pipeline_mode<synchronous>, transform_indices = @transform_1, window_bounds = array<i64: 392, 20>}, {pipeline_mode = #tpu.pipeline_mode<synchronous>, transform_indices = @transform_2, window_bounds = array<i64: 1, 20>}, {pipeline_mode = #tpu.pipeline_mode<synchronous>, transform_indices = @transform_3, window_bounds = array<i64: 20, 20>}, {pipeline_mode = #tpu.pipeline_mode<synchronous>, transform_indices = @transform_4, window_bounds = array<i64: 1, 20>}, {pipeline_mode = #tpu.pipeline_mode<synchronous>, transform_indices = @transform_5, window_bounds = array<i64: 1, 20>}, {pipeline_mode = #tpu.pipeline_mode<synchronous>, transform_indices = @transform_6, window_bounds = array<i64: 1, 1>}, {transform_indices = @transform_7, window_bounds = array<i64: 2, 21>}]} {
    %c0 = arith.constant 0 : index
    %c0_0 = arith.constant 0 : index
    %0 = vector.load %arg1[%c0, %c0_0] : memref<2x392xf32, #tpu.memory_space<vmem>>, vector<2x392xf32>
    %c0_1 = arith.constant 0 : index
    %c0_2 = arith.constant 0 : index
    %1 = vector.load %arg2[%c0_1, %c0_2] : memref<392x20xf32, #tpu.memory_space<vmem>>, vector<392x20xf32>
    %cst = arith.constant dense<0.000000e+00> : vector<2x20xf32>
    %2 = tpu.matmul %0, %1, %cst {dimension_numbers = #tpu.dot_dimension_numbers<[1], [0], [0], [1], [0, 0, 1, 1], [], []>} : vector<2x392xf32>, vector<392x20xf32>, vector<2x20xf32> -> vector<2x20xf32>
    %c0_3 = arith.constant 0 : index
    %c0_4 = arith.constant 0 : index
    %3 = vector.load %arg3[%c0_3, %c0_4] : memref<1x20xf32, #tpu.memory_space<vmem>>, vector<1x20xf32>
    %4 = vector.broadcast %3 : vector<1x20xf32> to vector<2x20xf32>
    %5 = arith.addf %2, %4 : vector<2x20xf32>
    %cst_5 = arith.constant 0.000000e+00 : f32
    %6 = vector.broadcast %cst_5 : f32 to vector<2x20xf32>
    %7 = arith.maximumf %5, %6 : vector<2x20xf32>
    %c0_6 = arith.constant 0 : index
    %c0_7 = arith.constant 0 : index
    %8 = vector.load %arg4[%c0_6, %c0_7] : memref<20x20xf32, #tpu.memory_space<vmem>>, vector<20x20xf32>
    %cst_8 = arith.constant dense<0.000000e+00> : vector<2x20xf32>
    %9 = tpu.matmul %7, %8, %cst_8 {dimension_numbers = #tpu.dot_dimension_numbers<[1], [0], [0], [1], [0, 0, 1, 1], [], []>} : vector<2x20xf32>, vector<20x20xf32>, vector<2x20xf32> -> vector<2x20xf32>
    %c0_9 = arith.constant 0 : index
    %c0_10 = arith.constant 0 : index
    %10 = vector.load %arg5[%c0_9, %c0_10] : memref<1x20xf32, #tpu.memory_space<vmem>>, vector<1x20xf32>
    %11 = vector.broadcast %10 : vector<1x20xf32> to vector<2x20xf32>
    %12 = arith.addf %9, %11 : vector<2x20xf32>
    %cst_11 = arith.constant 0.000000e+00 : f32
    %13 = vector.broadcast %cst_11 : f32 to vector<2x20xf32>
    %14 = arith.maximumf %12, %13 : vector<2x20xf32>
    %c0_12 = arith.constant 0 : index
    %c0_13 = arith.constant 0 : index
    %15 = vector.load %arg6[%c0_12, %c0_13] : memref<1x20xf32, #tpu.memory_space<vmem>>, vector<1x20xf32>
    %16 = vector.broadcast %15 : vector<1x20xf32> to vector<2x20xf32>
    %17 = arith.mulf %14, %16 : vector<2x20xf32>
    %cst_14 = arith.constant dense<0.000000e+00> : vector<2xf32>
    %18 = vector.multi_reduction <add>, %17, %cst_14 [1] : vector<2x20xf32> to vector<2xf32>
    %19 = vector.shape_cast %18 : vector<2xf32> to vector<2x1xf32>
    %c0_15 = arith.constant 0 : index
    %c0_16 = arith.constant 0 : index
    %20 = vector.load %arg7[%c0_15, %c0_16] : memref<1x1xf32, #tpu.memory_space<vmem>>, vector<1x1xf32>
    %21 = vector.broadcast %20 : vector<1x1xf32> to vector<2x1xf32>
    %22 = arith.addf %19, %21 : vector<2x1xf32>
    %23 = arith.negf %22 : vector<2x1xf32>
    %24 = math.exp %23 : vector<2x1xf32>
    %cst_17 = arith.constant 1.000000e+00 : f32
    %25 = vector.broadcast %cst_17 : f32 to vector<2x1xf32>
    %26 = arith.addf %25, %24 : vector<2x1xf32>
    %27 = arith.divf %25, %26 : vector<2x1xf32>
    %28 = tpu.concatenate %12, %27 in 1 : vector<2x20xf32>, vector<2x1xf32> -> vector<2x21xf32>
    %c0_18 = arith.constant 0 : index
    %c0_19 = arith.constant 0 : index
    %29 = vector.load %arg8[%c0_18, %c0_19] : memref<2x21xf32, #tpu.memory_space<vmem>>, vector<2x21xf32>
    tpu.vector_store %arg8[%c0_18, %c0_19], %28 {strides = array<i32>} : memref<2x21xf32, #tpu.memory_space<vmem>>, vector<2x21xf32>,
    return
  }
  func.func @transform_0(%arg0: i32) -> (i32, i32) {
    %c0_i32 = arith.constant 0 : i32
    %c0_i32_0 = arith.constant 0 : i32
    return %arg0, %c0_i32 : i32, i32
  }
  func.func @transform_1(%arg0: i32) -> (i32, i32) {
    %c0_i32 = arith.constant 0 : i32
    %c0_i32_0 = arith.constant 0 : i32
    %c0_i32_1 = arith.constant 0 : i32
    return %c0_i32, %c0_i32_0 : i32, i32
  }
  func.func @transform_2(%arg0: i32) -> (i32, i32) {
    %c0_i32 = arith.constant 0 : i32
    %c0_i32_0 = arith.constant 0 : i32
    %c0_i32_1 = arith.constant 0 : i32
    return %c0_i32, %c0_i32_0 : i32, i32
  }
  func.func @transform_3(%arg0: i32) -> (i32, i32) {
    %c0_i32 = arith.constant 0 : i32
    %c0_i32_0 = arith.constant 0 : i32
    %c0_i32_1 = arith.constant 0 : i32
    return %c0_i32, %c0_i32_0 : i32, i32
  }
  func.func @transform_4(%arg0: i32) -> (i32, i32) {
    %c0_i32 = arith.constant 0 : i32
    %c0_i32_0 = arith.constant 0 : i32
    %c0_i32_1 = arith.constant 0 : i32
    return %c0_i32, %c0_i32_0 : i32, i32
  }
  func.func @transform_5(%arg0: i32) -> (i32, i32) {
    %c0_i32 = arith.constant 0 : i32
    %c0_i32_0 = arith.constant 0 : i32
    %c0_i32_1 = arith.constant 0 : i32
    return %c0_i32, %c0_i32_0 : i32, i32
  }
  func.func @transform_6(%arg0: i32) -> (i32, i32) {
    %c0_i32 = arith.constant 0 : i32
    %c0_i32_0 = arith.constant 0 : i32
    %c0_i32_1 = arith.constant 0 : i32
    return %c0_i32, %c0_i32_0 : i32, i32
  }
  func.func @transform_7(%arg0: i32) -> (i32, i32) {
    %c0_i32 = arith.constant 0 : i32
    %c0_i32_0 = arith.constant 0 : i32
    return %arg0, %c0_i32 : i32, i32
  }
}

</mosaic_0001>

<bundles_post_ra>
// kernel: tpu_custom_call.1
= control target key start
LH: loop header
LB: loop body
LE: loop exit
PB: predicated region body
PF: predicated region fallthrough
CT: control target
= control target key end

     0   :  { %s778_s0 = inlined_call_operand.vmem [shape: f32[2,392], index: 0, kind: input, shape index: {}]   ;;  %s779_s1 = inlined_call_operand.vmem [shape: f32[392,20], index: 1, kind: input, shape index: {}]   ;;  %s780_s2 = inlined_call_operand.vmem [shape: f32[1,20], index: 2, kind: input, shape index: {}]   ;;  %s781_s3 = inlined_call_operand.vmem [shape: f32[20,20], index: 3, kind: input, shape index: {}]   ;;  %s782_s4 = inlined_call_operand.vmem [shape: f32[1,20], index: 4, kind: input, shape index: {}]   ;;  %s783_s5 = inlined_call_operand.vmem [shape: f32[1,20], index: 5, kind: input, shape index: {}]   ;;  %s784_s6 = inlined_call_operand.<no memory space> [shape: f32[1,1], index: 6, kind: input, shape index: {}]   ;;  %s785_s7 = inlined_call_operand.hbm [shape: f32[2,21], index: 7, kind: output, shape index: {}]  }
   0x1   :  { %v12_v0 = vstv %s784_s6 }
   0x2   :  { %13 = vst [vmem:[#allocation2] sm:$0x1] %v12_v0 }
   0x3   :  { %v46_v1 = vld [vmem:[%s779_s1 + $0x80] sm:$0xff]  ;;  %v47_v2 = vld [vmem:[%s779_s1 + $0x88] sm:$0xff]  ;;  %v537_v6 = vmov 0.0|0.0   ;;  %v48_v11 = vld [vmem:[%s779_s1 + $0x90] sm:$0xff]  ;;  %v538_v23 = vmov 1983009808   ;;  %v91_v25 = vlaneseq }
   0x4   :  { %v30_v3 = vld [vmem:[%s779_s1] sm:$0xff]  ;;  %v443_v4 = vpack.c.bf16 %v47_v2, %v46_v1  ;;  %v31_v5 = vld [vmem:[%s779_s1 + $0x8] sm:$0xff]  ;;  %475 = vmatprep.subr.bf16.mxu1 %v537_v6  ;;  %v49_v12 = vld [vmem:[%s779_s1 + $0x98] sm:$0xff]  ;;  %v89_v24 = vunpack.c.l.s4 %v538_v23 }
   0x5   :  { %v62_v7 = vld [vmem:[%s779_s1 + $0x100] sm:$0xff]  ;;  %v63_v8 = vld [vmem:[%s779_s1 + $0x108] sm:$0xff]  ;;  %v445_v9 = vpack.c.bf16 %v31_v5, %v30_v3  ;;  %v32_v13 = vld [vmem:[%s779_s1 + $0x10] sm:$0xff]  ;;  %v447_v14 = vpack.c.bf16 %v49_v12, %v48_v11  ;;  %v92_v36 = vshrl.u32 %v91_v25, 7 }
   0x6   :  { %v476_v10 = vpack.c.bf16 %v63_v8, %v62_v7  ;;  %444 = vmatprep.subr.bf16.mxu0 %v443_v4  ;;  %v33_v15 = vld [vmem:[%s779_s1 + $0x18] sm:$0xff]  ;;  %v64_v16 = vld [vmem:[%s779_s1 + $0x110] sm:$0xff]  ;;  %v50_v20 = vld [vmem:[%s779_s1 + $0xa0] sm:$0xff]  ;;  %v90_v35 = vunpack.c.0.s8 %v89_v24 }
   0x7   :  { %v65_v17 = vld [vmem:[%s779_s1 + $0x118] sm:$0xff]  ;;  %446 = vmatpush3.bf16.msra.mxu0 %v445_v9  ;;  %v449_v18 = vpack.c.bf16 %v33_v15, %v32_v13  ;;  %v51_v21 = vld [vmem:[%s779_s1 + $0xa8] sm:$0xff]  ;;  %v34_v22 = vld [vmem:[%s779_s1 + $0x20] sm:$0xff] }
   0x8   :  { %477 = vmatpush1.bf16.msra.mxu1 %v476_v10  ;;  %v479_v19 = vpack.c.bf16 %v65_v17, %v64_v16  ;;  %448 = vmatprep.subr.bf16.mxu0 %v447_v14  ;;  %v451_v26 = vpack.c.bf16 %v51_v21, %v50_v20  ;;  %v35_v27 = vld [vmem:[%s779_s1 + $0x28] sm:$0xff]  ;;  %v66_v28 = vld [vmem:[%s779_s1 + $0x120] sm:$0xff]  ;;  %v52_v30 = vld [vmem:[%s779_s1 + $0xb0] sm:$0xff]  ;;  %v93_v47 = vsub.s32 %v90_v35, %v92_v36 }
   0x9   :  { %478 = vmatprep.subr.bf16.mxu1 %v537_v6  ;;  %v67_v29 = vld [vmem:[%s779_s1 + $0x128] sm:$0xff]  ;;  %v53_v31 = vld [vmem:[%s779_s1 + $0xb8] sm:$0xff]  ;;  %v453_v32 = vpack.c.bf16 %v35_v27, %v34_v22  ;;  %v36_v34 = vld [vmem:[%s779_s1 + $0x30] sm:$0xff] }
   0xa   :  { %v482_v33 = vpack.c.bf16 %v67_v29, %v66_v28  ;;  %v455_v37 = vpack.c.bf16 %v53_v31, %v52_v30  ;;  %v37_v38 = vld [vmem:[%s779_s1 + $0x38] sm:$0xff]  ;;  %v68_v39 = vld [vmem:[%s779_s1 + $0x130] sm:$0xff]  ;;  %v54_v41 = vld [vmem:[%s779_s1 + $0xc0] sm:$0xff] }
   0xb   :  { %450 = vmatpush3.bf16.msra.mxu0 %v449_v18  ;;  %v69_v40 = vld [vmem:[%s779_s1 + $0x138] sm:$0xff]  ;;  %v55_v42 = vld [vmem:[%s779_s1 + $0xc8] sm:$0xff]  ;;  %v457_v43 = vpack.c.bf16 %v37_v38, %v36_v34  ;;  %v38_v45 = vld [vmem:[%s779_s1 + $0x40] sm:$0xff] }
   0xc   :  { %480 = vmatpush1.bf16.msra.mxu1 %v479_v19  ;;  %452 = vmatprep.subr.bf16.mxu0 %v451_v26  ;;  %v485_v44 = vpack.c.bf16 %v69_v40, %v68_v39  ;;  %v39_v46 = vld [vmem:[%s779_s1 + $0x48] sm:$0xff]  ;;  %v459_v48 = vpack.c.bf16 %v55_v42, %v54_v41  ;;  %v70_v49 = vld [vmem:[%s779_s1 + $0x140] sm:$0xff]  ;;  %v56_v51 = vld [vmem:[%s779_s1 + $0xd0] sm:$0xff] }
   0xd   :  { %481 = vmatprep.subr.bf16.mxu1 %v537_v6  ;;  %v71_v50 = vld [vmem:[%s779_s1 + $0x148] sm:$0xff]  ;;  %v57_v52 = vld [vmem:[%s779_s1 + $0xd8] sm:$0xff]  ;;  %v461_v53 = vpack.c.bf16 %v39_v46, %v38_v45  ;;  %v29_v54 = vld [vmem:[%s778_s0] sm:$0xff] }
   0xe   :  { %v488_v55 = vpack.c.bf16 %v71_v50, %v70_v49  ;;  %v40_v56 = vld [vmem:[%s779_s1 + $0x50] sm:$0xff]  ;;  %v87_v57 = vcombine.high %v29_v54, %v29_v54  ;;  %v94_v58 = vrot.slane %v29_v54, %v93_v47 }
   0xf   :  { %454 = vmatpush3.bf16.msra.mxu0 %v453_v32 }
  0x10   :  { %483 = vmatpush1.bf16.msra.mxu1 %v482_v33  ;;  %456 = vmatprep.subr.bf16.mxu0 %v455_v37 }
  0x11   :  { %484 = vmatprep.subr.bf16.mxu1 %v537_v6 }
  0x13   :  { %458 = vmatpush3.bf16.msra.mxu0 %v457_v43 }
  0x14   :  { %486 = vmatpush1.bf16.msra.mxu1 %v485_v44 }
  0x15   :  { %14 = vsyncpa [#allocation4], 0  ;;  %460 = vmatprep.subr.bf16.mxu0 %v459_v48  ;;  %487 = vmatprep.subr.bf16.mxu1 %v537_v6  ;;  %v463_v59 = vpack.c.bf16 %v57_v52, %v56_v51  ;;  %v41_v60 = vld [vmem:[%s779_s1 + $0x58] sm:$0xff]  ;;  %v72_v61 = vld [vmem:[%s779_s1 + $0x150] sm:$0xff]  ;;  %v102_v1 = vcombine.high %v94_v58, %v94_v58  ;;  %v101_v2 = vrot.slane %v87_v57, %v93_v47  ;;  %vm107_vm0 = vcmask 64512  }
  0x16   :  { %v73_v62 = vld [vmem:[%s779_s1 + $0x158] sm:$0xff]  ;;  %v58_v63 = vld [vmem:[%s779_s1 + $0xe0] sm:$0xff]  ;;  %v59_v0 = vld [vmem:[%s779_s1 + $0xe8] sm:$0xff]  ;;  %v465_v3 = vpack.c.bf16 %v41_v60, %v40_v56  ;;  %v539_v23 = vmov 0.0   ;;  %vm265_vm1 = vcmask 1043456   ;;  %vm540_vm2 = vmmov 0  }
  0x17   :  { %462 = vmatpush3.bf16.msra.mxu0 %v461_v53  ;;  %v491_v4 = vpack.c.bf16 %v73_v62, %v72_v61  ;;  %v42_v5 = vld [vmem:[%s779_s1 + $0x60] sm:$0xff]  ;;  %v103_v7 = vcombine.high %v101_v2, %v101_v2  ;;  %v467_v8 = vpack.c.bf16 %v59_v0, %v58_v63  ;;  %v43_v9 = vld [vmem:[%s779_s1 + $0x68] sm:$0xff]  ;;  %v60_v12 = vld [vmem:[%s779_s1 + $0xf0] sm:$0xff]  ;;  %174 = vmatprep.mubr.f32.mxu0 %v102_v1  ;;  %vm261_vm3 = vcmask 162816  }
  0x18   :  { %489 = vmatpush1.bf16.msra.mxu1 %v488_v55  ;;  %464 = vmatprep.subr.bf16.mxu0 %v463_v59  ;;  %v74_v10 = vld [vmem:[%s779_s1 + $0x160] sm:$0xff]  ;;  %v75_v11 = vld [vmem:[%s779_s1 + $0x168] sm:$0xff]  ;;  %v61_v13 = vld [vmem:[%s779_s1 + $0xf8] sm:$0xff]  ;;  %v469_v14 = vpack.c.bf16 %v43_v9, %v42_v5  ;;  %vm348_vm4 = vcmask 156672   ;;  %vm371_vm5 = vcmask 164864  }
  0x19   :  { %490 = vmatprep.subr.bf16.mxu1 %v537_v6  ;;  %388 = vmatprep.mubr.msk.f32.mxu1 %vm107_vm0, %v103_v7  ;;  %v494_v15 = vpack.c.bf16 %v75_v11, %v74_v10  ;;  %v44_v16 = vld [vmem:[%s779_s1 + $0x70] sm:$0xff]  ;;  %v471_v17 = vpack.c.bf16 %v61_v13, %v60_v12  ;;  %v45_v18 = vld [vmem:[%s779_s1 + $0x78] sm:$0xff]  ;;  %v78_v24 = vld [vmem:[%s779_s1 + $0x180] sm:$0xff] }
  0x1a   :  { %v76_v19 = vld [vmem:[%s779_s1 + $0x170] sm:$0xff]  ;;  %v77_v20 = vld [vmem:[%s779_s1 + $0x178] sm:$0xff]  ;;  %v473_v21 = vpack.c.bf16 %v45_v18, %v44_v16  ;;  %v251_v25 = vld [vmem:[%s781_s3] sm:$0xff] }
  0x1b   :  { %466 = vmatpush3.bf16.msra.mxu0 %v465_v3  ;;  %v497_v22 = vpack.c.bf16 %v77_v20, %v76_v19  ;;  %v252_v26 = vld [vmem:[%s781_s3 + $0x8] sm:$0xff]  ;;  %v253_v28 = vld [vmem:[%s781_s3 + $0x10] sm:$0xf]  ;;  %v387_v30 = vld [vmem:[%s780_s2] ss:$0 sm:$0xff]  ;;  %s541_s2 = smov 20  }
  0x1c   :  { %492 = vmatpush1.bf16.msra.mxu1 %v491_v4  ;;  %468 = vmatprep.subr.bf16.mxu0 %v467_v8  ;;  %v500_v27 = vpack.c.bf16 %v252_v26, %v251_v25  ;;  %v389_v37 = vld [vmem:[%s782_s4] ss:$0 sm:$0xff]  ;;  %s542_s4 = smov [#allocation3]  }
  0x1d   :  { %493 = vmatprep.subr.bf16.mxu1 %v537_v6  ;;  %v392_v41 = vld [vmem:[%s783_s5] ss:$0 sm:$0xff]  ;;  %s379_s14 = sshll.u32 %s542_s4, 4  ;;  %s380_s14 = int_to_ptr.vmem [resolvable:$true] %s379_s14 }
  0x1e   :  { %v393_v45 = vld [vmem:[#allocation2] ss:$0 sm:$0xff]  ;;  %s513_s5 = scalar_lea.vmem %s380_s14, 32  ;;  %p518_p1 = scmp.lt.s32.totalorder %s380_s14, %s380_s14 }
  0x1f   :  { %470 = vmatpush3.bf16.msra.mxu0 %v469_v14  ;;  %p514_p0 = scmp.ne.s32.totalorder %s380_s14, %s513_s5  ;;  %p519_p2 = scmp.lt.s32.totalorder %s513_s5, %s513_s5 }
  0x20   :  { %495 = vmatpush1.bf16.msra.mxu1 %v494_v15  ;;  %472 = vmatprep.subr.bf16.mxu0 %v471_v17 }
  0x21   :  { %496 = vmatprep.subr.bf16.mxu1 %v537_v6  ;;  %p520_p3 = por %p519_p2, %p518_p1 }
  0x23   :  { %474 = vmatpush3.bf16.msra.mxu0 %v473_v21  ;;  %p521_p4 = pnand %p520_p3, %p514_p0 }
  0x24   :  { %498 = vmatpush1.bf16.msra.mxu1 %v497_v22  ;;  %499 = vmatprep.subr.bf16.mxu0 %v537_v6 }
  0x25   :  { %212 = vmatprep.subr.mxu1 %v539_v23 }
  0x26   :  { %175 = vmatmul.mubr.f32.vlgmr.msra.gmra.mrb[0].mxu0 %v94_v58 }
  0x27   :  { %501 = vmatpush3.bf16.msra.mxu0 %v500_v27  ;;  %440 = vmatprep.mubr.msk.f32.mxu0 %vm540_vm2, %v539_v23 }
  0x28   :  { %213 = vmatpush1.msra.mxu1 %v78_v24  ;;  %438 = vmatprep.subr.mxu0 %v539_v23 }
  0x29   :  { %245 = vmatmul.mubr.f32.vlgmr.msra.gmra.mrb[0].mxu1 %v101_v2 }
  0x2b   :  { %439 = vmatpush3.msk.msra.mxu0 %vm265_vm1, %v253_v28 }
  0xf9   :  { %v427_v6 = vpop.f32.mrb[0].mxu0 }
  0xfa   :  { %v428_v29 = vpop.f32.mrb[1].mxu0 }
  0xfb   :  { %v429_v31 = vadd.f32 %v428_v29, %v427_v6 }
  0xfc   :  { %v246_v32 = vpop.f32.mrb[0].mxu1 }
  0xfd   :  { %v248_v33 = vpop.f32.mrb[1].mxu1  ;;  %v177_v34 = vadd.f32 %v429_v31, %v387_v30 }
  0xff   :  { %v247_v35 = vadd.f32 %v246_v32, %v177_v34 }
 0x101   :  { %v250_v36 = vmax.f32 %v247_v35, 0.0 }
 0x103   :  { %441 = vmatmul.mubr.msk.f32.vlgmr.msra.gmra.mrb[2].mxu0 %vm261_vm3, %v250_v36 }
 0x1d6   :  { %v335_v38 = vpop.f32.mrb[2].mxu0 }
 0x1d7   :  { %v336_v39 = vadd.f32 %v389_v37, %v335_v38  ;;  %v442_v40 = vpop.f32.mrb[3].mxu0 }
 0x1d9   :  { %v339_v42 = vmax.f32 %v336_v39, 0.0 }
 0x1db   :  { %v347_v43 = vmul.f32 %v392_v41, %v339_v42 }
 0x1dd   :  { %v349_v44 = vsel %vm348_vm4, %v347_v43, 0.0 }
 0x1de   :  { %350 = vadd.xlane.f32.xlu0 %v349_v44 }
 0x26b   :  { %v351_v46 = vpop.xlane.xlu0 %350 }
 0x26c   :  { %v359_v47 = vadd.f32 %v393_v45, %v351_v46 }
 0x26e   :  { %v394_v48 = vmul.f32 -1.442695, %v359_v47 }
 0x270   :  { %509 = vpow2.f32 %v394_v48 }
 0x27a   :  { %v510_v49 = vpop.eup %509 }
 0x27b   :  { %v363_v50 = vadd.f32 1.0, %v510_v49 }
 0x27d   :  { %511 = vrcp.f32 %v363_v50 }
 0x287   :  { %v512_v51 = vpop.eup %511 }
 0x288   :  { %367 = vrot.lane.b32.xlu0 %v512_v51, %s541_s2 }
 0x2fa   :  { %v368_v52 = vpop.permute.xlu0 %367 }
 0x2fb   :  { %v370_v53 = vsel %vm261_vm3, %v336_v39, %v368_v52 }
 0x2fc   :  { %372 = vst.msk [vmem:[#allocation3] sm:$0x3] %vm371_vm5, %v370_v53 }
 0x2fd   :  { %524 = shalt.err (!%p521_p4)
}
 0x2fe   :  { %s525_s17 = scalar_lea.hbm %s785_s7, 32 }
 0x2ff   :  { %p526_p5 = scmp.ne.s32.totalorder %s785_s7, %s525_s17  ;;  %p529_p6 = scmp.lt.u32.totalorder %s525_s17, %s785_s7 }
 0x301   :  { %p531_p7 = pnand %p529_p6, %p526_p5 }
 0x303   :  { %534 = shalt.err (!%p531_p7)
}
 0x304   :  { %382 = dma.vmem_to_hbm [thread:$0]  %s380_s14, 32, %s785_s7, [#allocation4]  }
 0x305   :  { %535 = dma.done.wait [#allocation4], 32  }
 0x306   :  { %536 = vsyncadd [#allocation4], 4294967264 }
 0x307   :  { %386 = vsyncpa [#allocation4], 1 }

</bundles_post_ra>
